<compile_context>
chip_gen: v5e
topology: v5e:2x2
jax: 0.10.0
libtpu: 0.0.40
codegen_flags: <defaults>
</compile_context>

<pallas_src>
import jax
import jax.numpy as jnp
from jax.experimental import pallas as pl
from jax.experimental.pallas import tpu as pltpu


def _round_up(x, m):
    return ((x + m - 1) // m) * m


def _choose_tb(n_tokens, s_pad, max_tb):
    """Largest multiple of 8 that divides n_tokens and aligns with sequences."""
    best = 8
    t = 8
    limit = min(max_tb, n_tokens)
    while t <= limit:
        if n_tokens % t == 0 and (s_pad % t == 0 or t % s_pad == 0):
            best = t
        t += 8
    return best


def _make_embeddings_kernel(block_tokens, hidden, type_vocab, eps, add_pos):
    unroll = min(8, block_tokens)

    def kernel(ids_ref, word_hbm, tt_ref, type_ref, *rest):
        if add_pos:
            pos_ref, gamma_ref, beta_ref, out_ref, gather_ref, sem = rest
        else:
            gamma_ref, beta_ref, out_ref, gather_ref, sem = rest
            pos_ref = None

        base = pl.program_id(0) * block_tokens

        # ---- Phase 1: fire one row DMA per token (HBM word table -> VMEM). --
        def issue(t, carry):
            wid = ids_ref[base + t]
            pltpu.make_async_copy(
                word_hbm.at[pl.ds(wid, 1), :],
                gather_ref.at[pl.ds(t, 1), :],
                sem,
            ).start()
            return carry

        jax.lax.fori_loop(0, block_tokens, issue, 0, unroll=unroll)

        # ---- Phase 2 (overlaps the gather DMAs): vectorized token-type ------
        # ---- one-hot select + positional slice over the whole block. --------
        if add_pos:
            rest_f32 = pos_ref[...].astype(jnp.float32)
        else:
            rest_f32 = jnp.zeros((block_tokens, hidden), jnp.float32)
        tt = tt_ref[...]                                      # (TB, 1) int32
        type_tab = type_ref[...].astype(jnp.float32)          # (T, H) tiny
        for v in range(type_vocab):                           # T is small (~2)
            mask = (tt == v).astype(jnp.float32)              # (TB, 1)
            rest_f32 = rest_f32 + mask * type_tab[v:v + 1, :] # -> (TB, H)

        # ---- Phase 3: drain all row-gather DMAs (same-size dummy waits). ----
        def drain(t, carry):
            pltpu.make_async_copy(
                word_hbm.at[pl.ds(0, 1), :],
                gather_ref.at[pl.ds(0, 1), :],
                sem,
            ).wait()
            return carry

        jax.lax.fori_loop(0, block_tokens, drain, 0, unroll=unroll)

        # ---- Phase 4: fused LayerNorm over the lane-dense hidden axis. ------
        x = gather_ref[...].astype(jnp.float32) + rest_f32
        mean = jnp.mean(x, axis=-1, keepdims=True)
        cent = x - mean
        var = jnp.mean(cent * cent, axis=-1, keepdims=True)
        inv = jax.lax.rsqrt(var + eps)
        y = cent * inv * gamma_ref[...] + beta_ref[...]
        out_ref[...] = y.astype(out_ref.dtype)
        # TODO(synk): training-mode dropout not implemented (inference only).

    return kernel


def bert_embeddings(input_ids, token_type_ids, word_table, type_table,
                    gamma, beta, pos_table=None, eps=1e-12,
                    max_block_tokens=512):
    """input_ids, token_type_ids: [B, S] int; tables: [*, H]; returns [B, S, H]."""
    B, S = input_ids.shape
    V, H = word_table.shape
    T = type_table.shape[0]
    if token_type_ids is None:
        token_type_ids = jnp.zeros_like(input_ids)
    add_pos = pos_table is not None
    out_dtype = word_table.dtype

    # Pad the sequence axis only if needed (S already a multiple of 8 -> no
    # padding, no post-kernel slice copy). Blocks never cross a sequence.
    S_pad = _round_up(S, 8)
    pad_s = S_pad - S
    ids = input_ids.astype(jnp.int32)
    tts = token_type_ids.astype(jnp.int32)
    if pad_s:
        ids = jnp.pad(ids, ((0, 0), (0, pad_s)))
        tts = jnp.pad(tts, ((0, 0), (0, pad_s)))
    # Clamp ids so an out-of-range id can never drive an OOB HBM DMA.
    ids = jnp.clip(ids, 0, V - 1)

    n_tok = B * S_pad
    tb = _choose_tb(n_tok, S_pad, max_block_tokens)
    grid = (n_tok // tb,)

    ids_flat = ids.reshape(n_tok)
    tt_col = tts.reshape(n_tok, 1)
    gamma2d = gamma.reshape(1, H).astype(jnp.float32)
    beta2d = beta.reshape(1, H).astype(jnp.float32)

    in_specs = [
        pl.BlockSpec(memory_space=pl.ANY),                     # word table (HBM)
        pl.BlockSpec((tb, 1), lambda i, ids: (i, 0)),          # token-type ids
        pl.BlockSpec((T, H), lambda i, ids: (0, 0)),           # type table (tiny, resident)
    ]
    operands = [word_table, tt_col, type_table]

    if add_pos:
        P = pos_table.shape[0]
        pos_sp = pos_table[:S_pad] if P >= S_pad else jnp.pad(
            pos_table, ((0, S_pad - P), (0, 0)))
        if tb <= S_pad:
            bps = S_pad // tb
            pos_use = pos_sp
            in_specs.append(pl.BlockSpec((tb, H), lambda i, ids: (i % bps, 0)))
        else:
            pos_use = jnp.tile(pos_sp, (tb // S_pad, 1))       # block spans k seqs
            in_specs.append(pl.BlockSpec((tb, H), lambda i, ids: (0, 0)))
        operands.append(pos_use)

    in_specs += [
        pl.BlockSpec((1, H), lambda i, ids: (0, 0)),           # gamma
        pl.BlockSpec((1, H), lambda i, ids: (0, 0)),           # beta
    ]
    operands += [gamma2d, beta2d]

    kernel = _make_embeddings_kernel(tb, H, T, float(eps), add_pos)

    # Scoped-VMEM budget: gather buffer + double-buffered streamed blocks
    # (tables themselves stay in HBM), with headroom.
    word_bytes = tb * H * word_table.dtype.itemsize
    blk_bytes = tb * H * 4
    est = word_bytes + 2 * blk_bytes * (3 if add_pos else 2) + (T + 2) * H * 8
    vmem_limit = max(32 << 20, int(est * 1.5) + (4 << 20))

    out = pl.pallas_call(
        kernel,
        out_shape=jax.ShapeDtypeStruct((n_tok, H), out_dtype),
        grid_spec=pltpu.PrefetchScalarGridSpec(
            num_scalar_prefetch=1,
            grid=grid,
            in_specs=in_specs,
            out_specs=pl.BlockSpec((tb, H), lambda i, ids: (i, 0)),
            scratch_shapes=[
                pltpu.VMEM((tb, H), word_table.dtype),         # gathered word rows
                pltpu.SemaphoreType.DMA(()),                   # shared gather sem
            ],
        ),
        compiler_params=pltpu.CompilerParams(
            dimension_semantics=("parallel",),
            vmem_limit_bytes=vmem_limit,
        ),
    )(ids_flat, *operands)

    out = out.reshape(B, S_pad, H)
    if pad_s:
        out = out[:, :S, :]
    return out


if __name__ == "__main__":
    key = jax.random.PRNGKey(0)
    k_ids, k_tok, k_w, k_t, k_p, k_g, k_b = jax.random.split(key, 7)

    batch, seq, hidden = 2, 8, 32
    vocab, type_vocab, max_pos = 50, 2, 16
    eps = 1e-12

    input_ids = jax.random.randint(k_ids, (batch, seq), 0, vocab, dtype=jnp.int32)
    token_type_ids = jax.random.randint(k_tok, (batch, seq), 0, type_vocab,
                                        dtype=jnp.int32)

    word_table = jax.random.normal(k_w, (vocab, hidden), dtype=jnp.float32) * 0.02
    word_table = word_table.at[0].set(0.0)   # padding_idx=0 row
    type_table = jax.random.normal(k_t, (type_vocab, hidden), dtype=jnp.float32) * 0.02
    pos_table = jax.random.normal(k_p, (max_pos, hidden), dtype=jnp.float32) * 0.02
    gamma = 1.0 + 0.1 * jax.random.normal(k_g, (hidden,), dtype=jnp.float32)
    beta = 0.1 * jax.random.normal(k_b, (hidden,), dtype=jnp.float32)

    # Pure-JAX reference (PyTorch BertEmbeddings forward, dropout = identity).
    def reference(add_pos):
        emb = word_table[input_ids] + type_table[token_type_ids]
        if add_pos:
            emb = emb + pos_table[jnp.arange(seq)][None, :, :]
        mean = emb.mean(-1, keepdims=True)
        var = ((emb - mean) ** 2).mean(-1, keepdims=True)
        return (emb - mean) / jnp.sqrt(var + eps) * gamma + beta

    # max_block_tokens=8 -> 2 grid steps at this toy size (exercises pipeline).
    out = bert_embeddings(input_ids, token_type_ids, word_table, type_table,
                          gamma, beta, pos_table=pos_table, eps=eps,
                          max_block_tokens=8)
    out = jax.block_until_ready(out)
    assert out.shape == (batch, seq, hidden)
    assert jnp.allclose(out, reference(True), atol=1e-5, rtol=1e-5)

    # Also exercise add_positional_encoding=False and a block spanning 2 seqs.
    out_np = bert_embeddings(input_ids, token_type_ids, word_table, type_table,
                             gamma, beta, pos_table=None, eps=eps,
                             max_block_tokens=16)
    out_np = jax.block_until_ready(out_np)
    assert jnp.allclose(out_np, reference(False), atol=1e-5, rtol=1e-5)

    print("KERNEL_OK")
</pallas_src>

<mosaic_0001>
module attributes {stable_mosaic.version = 11 : i64} {
  func.func @kernel(%arg0: i32, %arg1: memref<16xi32, #tpu.memory_space<smem>>, %arg2: memref<50x32xf32, #tpu.memory_space<any>>, %arg3: memref<8x1xi32, #tpu.memory_space<vmem>>, %arg4: memref<2x32xf32, #tpu.memory_space<vmem>>, %arg5: memref<8x32xf32, #tpu.memory_space<vmem>>, %arg6: memref<1x32xf32, #tpu.memory_space<vmem>>, %arg7: memref<1x32xf32, #tpu.memory_space<vmem>>, %arg8: memref<8x32xf32, #tpu.memory_space<vmem>>, %arg9: memref<8x32xf32, #tpu.memory_space<vmem>>, %arg10: memref<!tpu.dma_semaphore, #tpu.memory_space<semaphore_mem>>) attributes {dimension_semantics = [#tpu.dimension_semantics<parallel>], iteration_bounds = array<i64: 2>, scalar_prefetch = 1 : i64, scratch_operands = 2 : i64, tpu.core_type = #tpu.core_type<tc>, window_params = [{}, {transform_indices = @transform_1, window_bounds = array<i64: 8, 1>}, {pipeline_mode = #tpu.pipeline_mode<synchronous>, transform_indices = @transform_2, window_bounds = array<i64: 2, 32>}, {transform_indices = @transform_3, window_bounds = array<i64: 8, 32>}, {pipeline_mode = #tpu.pipeline_mode<synchronous>, transform_indices = @transform_4, window_bounds = array<i64: 1, 32>}, {pipeline_mode = #tpu.pipeline_mode<synchronous>, transform_indices = @transform_5, window_bounds = array<i64: 1, 32>}, {transform_indices = @transform_6, window_bounds = array<i64: 8, 32>}]} {
    %c8_i32 = arith.constant 8 : i32
    %0 = arith.muli %arg0, %c8_i32 : i32
    %c0_i32 = arith.constant 0 : i32
    %1 = arith.addi %0, %c0_i32 : i32
    %2 = arith.index_cast %1 : i32 to index
    %3 = memref.load %arg1[%2] : memref<16xi32, #tpu.memory_space<smem>>
    %c0_i32_0 = arith.constant 0 : i32
    %4 = tpu.memref_slice %arg2[%3, %c0_i32_0] : memref<50x32xf32, #tpu.memory_space<any>> -> memref<1x32xf32, #tpu.memory_space<any>>
    %c0_i32_1 = arith.constant 0 : i32
    %5 = tpu.memref_slice %arg9[%c0_i32, %c0_i32_1] : memref<8x32xf32, #tpu.memory_space<vmem>> -> memref<1x32xf32, #tpu.memory_space<vmem>>
    tpu.enqueue_dma source(%4 : memref<1x32xf32, #tpu.memory_space<any>>) target(%5 : memref<1x32xf32, #tpu.memory_space<vmem>>) target_semaphore(%arg10 : memref<!tpu.dma_semaphore, #tpu.memory_space<semaphore_mem>>)
    %c1_i32 = arith.constant 1 : i32
    %6 = arith.addi %0, %c1_i32 : i32
    %7 = arith.index_cast %6 : i32 to index
    %8 = memref.load %arg1[%7] : memref<16xi32, #tpu.memory_space<smem>>
    %c0_i32_2 = arith.constant 0 : i32
    %9 = tpu.memref_slice %arg2[%8, %c0_i32_2] : memref<50x32xf32, #tpu.memory_space<any>> -> memref<1x32xf32, #tpu.memory_space<any>>
    %c0_i32_3 = arith.constant 0 : i32
    %10 = tpu.memref_slice %arg9[%c1_i32, %c0_i32_3] : memref<8x32xf32, #tpu.memory_space<vmem>> -> memref<1x32xf32, #tpu.memory_space<vmem>>
    tpu.enqueue_dma source(%9 : memref<1x32xf32, #tpu.memory_space<any>>) target(%10 : memref<1x32xf32, #tpu.memory_space<vmem>>) target_semaphore(%arg10 : memref<!tpu.dma_semaphore, #tpu.memory_space<semaphore_mem>>)
    %c2_i32 = arith.constant 2 : i32
    %11 = arith.addi %0, %c2_i32 : i32
    %12 = arith.index_cast %11 : i32 to index
    %13 = memref.load %arg1[%12] : memref<16xi32, #tpu.memory_space<smem>>
    %c0_i32_4 = arith.constant 0 : i32
    %14 = tpu.memref_slice %arg2[%13, %c0_i32_4] : memref<50x32xf32, #tpu.memory_space<any>> -> memref<1x32xf32, #tpu.memory_space<any>>
    %c0_i32_5 = arith.constant 0 : i32
    %15 = tpu.memref_slice %arg9[%c2_i32, %c0_i32_5] : memref<8x32xf32, #tpu.memory_space<vmem>> -> memref<1x32xf32, #tpu.memory_space<vmem>>
    tpu.enqueue_dma source(%14 : memref<1x32xf32, #tpu.memory_space<any>>) target(%15 : memref<1x32xf32, #tpu.memory_space<vmem>>) target_semaphore(%arg10 : memref<!tpu.dma_semaphore, #tpu.memory_space<semaphore_mem>>)
    %c3_i32 = arith.constant 3 : i32
    %16 = arith.addi %0, %c3_i32 : i32
    %17 = arith.index_cast %16 : i32 to index
    %18 = memref.load %arg1[%17] : memref<16xi32, #tpu.memory_space<smem>>
    %c0_i32_6 = arith.constant 0 : i32
    %19 = tpu.memref_slice %arg2[%18, %c0_i32_6] : memref<50x32xf32, #tpu.memory_space<any>> -> memref<1x32xf32, #tpu.memory_space<any>>
    %c0_i32_7 = arith.constant 0 : i32
    %20 = tpu.memref_slice %arg9[%c3_i32, %c0_i32_7] : memref<8x32xf32, #tpu.memory_space<vmem>> -> memref<1x32xf32, #tpu.memory_space<vmem>>
    tpu.enqueue_dma source(%19 : memref<1x32xf32, #tpu.memory_space<any>>) target(%20 : memref<1x32xf32, #tpu.memory_space<vmem>>) target_semaphore(%arg10 : memref<!tpu.dma_semaphore, #tpu.memory_space<semaphore_mem>>)
    %c4_i32 = arith.constant 4 : i32
    %21 = arith.addi %0, %c4_i32 : i32
    %22 = arith.index_cast %21 : i32 to index
    %23 = memref.load %arg1[%22] : memref<16xi32, #tpu.memory_space<smem>>
    %c0_i32_8 = arith.constant 0 : i32
    %24 = tpu.memref_slice %arg2[%23, %c0_i32_8] : memref<50x32xf32, #tpu.memory_space<any>> -> memref<1x32xf32, #tpu.memory_space<any>>
    %c0_i32_9 = arith.constant 0 : i32
    %25 = tpu.memref_slice %arg9[%c4_i32, %c0_i32_9] : memref<8x32xf32, #tpu.memory_space<vmem>> -> memref<1x32xf32, #tpu.memory_space<vmem>>
    tpu.enqueue_dma source(%24 : memref<1x32xf32, #tpu.memory_space<any>>) target(%25 : memref<1x32xf32, #tpu.memory_space<vmem>>) target_semaphore(%arg10 : memref<!tpu.dma_semaphore, #tpu.memory_space<semaphore_mem>>)
    %c5_i32 = arith.constant 5 : i32
    %26 = arith.addi %0, %c5_i32 : i32
    %27 = arith.index_cast %26 : i32 to index
    %28 = memref.load %arg1[%27] : memref<16xi32, #tpu.memory_space<smem>>
    %c0_i32_10 = arith.constant 0 : i32
    %29 = tpu.memref_slice %arg2[%28, %c0_i32_10] : memref<50x32xf32, #tpu.memory_space<any>> -> memref<1x32xf32, #tpu.memory_space<any>>
    %c0_i32_11 = arith.constant 0 : i32
    %30 = tpu.memref_slice %arg9[%c5_i32, %c0_i32_11] : memref<8x32xf32, #tpu.memory_space<vmem>> -> memref<1x32xf32, #tpu.memory_space<vmem>>
    tpu.enqueue_dma source(%29 : memref<1x32xf32, #tpu.memory_space<any>>) target(%30 : memref<1x32xf32, #tpu.memory_space<vmem>>) target_semaphore(%arg10 : memref<!tpu.dma_semaphore, #tpu.memory_space<semaphore_mem>>)
    %c6_i32 = arith.constant 6 : i32
    %31 = arith.addi %0, %c6_i32 : i32
    %32 = arith.index_cast %31 : i32 to index
    %33 = memref.load %arg1[%32] : memref<16xi32, #tpu.memory_space<smem>>
    %c0_i32_12 = arith.constant 0 : i32
    %34 = tpu.memref_slice %arg2[%33, %c0_i32_12] : memref<50x32xf32, #tpu.memory_space<any>> -> memref<1x32xf32, #tpu.memory_space<any>>
    %c0_i32_13 = arith.constant 0 : i32
    %35 = tpu.memref_slice %arg9[%c6_i32, %c0_i32_13] : memref<8x32xf32, #tpu.memory_space<vmem>> -> memref<1x32xf32, #tpu.memory_space<vmem>>
    tpu.enqueue_dma source(%34 : memref<1x32xf32, #tpu.memory_space<any>>) target(%35 : memref<1x32xf32, #tpu.memory_space<vmem>>) target_semaphore(%arg10 : memref<!tpu.dma_semaphore, #tpu.memory_space<semaphore_mem>>)
    %c7_i32 = arith.constant 7 : i32
    %36 = arith.addi %0, %c7_i32 : i32
    %37 = arith.index_cast %36 : i32 to index
    %38 = memref.load %arg1[%37] : memref<16xi32, #tpu.memory_space<smem>>
    %c0_i32_14 = arith.constant 0 : i32
    %39 = tpu.memref_slice %arg2[%38, %c0_i32_14] : memref<50x32xf32, #tpu.memory_space<any>> -> memref<1x32xf32, #tpu.memory_space<any>>
    %c0_i32_15 = arith.constant 0 : i32
    %40 = tpu.memref_slice %arg9[%c7_i32, %c0_i32_15] : memref<8x32xf32, #tpu.memory_space<vmem>> -> memref<1x32xf32, #tpu.memory_space<vmem>>
    tpu.enqueue_dma source(%39 : memref<1x32xf32, #tpu.memory_space<any>>) target(%40 : memref<1x32xf32, #tpu.memory_space<vmem>>) target_semaphore(%arg10 : memref<!tpu.dma_semaphore, #tpu.memory_space<semaphore_mem>>)
    %c8_i32_16 = arith.constant 8 : i32
    %c0 = arith.constant 0 : index
    %c0_17 = arith.constant 0 : index
    %41 = vector.load %arg5[%c0, %c0_17] : memref<8x32xf32, #tpu.memory_space<vmem>>, vector<8x32xf32>
    %c0_18 = arith.constant 0 : index
    %c0_19 = arith.constant 0 : index
    %42 = vector.load %arg3[%c0_18, %c0_19] : memref<8x1xi32, #tpu.memory_space<vmem>>, vector<8x1xi32>
    %c0_20 = arith.constant 0 : index
    %c0_21 = arith.constant 0 : index
    %43 = vector.load %arg4[%c0_20, %c0_21] : memref<2x32xf32, #tpu.memory_space<vmem>>, vector<2x32xf32>
    %c0_i32_22 = arith.constant 0 : i32
    %44 = vector.broadcast %c0_i32_22 : i32 to vector<8x1xi32>
    %45 = arith.cmpi eq, %42, %44 : vector<8x1xi32>
    %46 = arith.extui %45 : vector<8x1xi1> to vector<8x1xi32>
    %47 = arith.sitofp %46 : vector<8x1xi32> to vector<8x1xf32>
    %48 = vector.extract_strided_slice %43 {offsets = [0, 0], sizes = [1, 32], strides = [1, 1]} : vector<2x32xf32> to vector<1x32xf32>
    %49 = vector.broadcast %47 : vector<8x1xf32> to vector<8x32xf32>
    %50 = vector.broadcast %48 : vector<1x32xf32> to vector<8x32xf32>
    %51 = arith.mulf %49, %50 : vector<8x32xf32>
    %52 = arith.addf %41, %51 : vector<8x32xf32>
    %c1_i32_23 = arith.constant 1 : i32
    %53 = vector.broadcast %c1_i32_23 : i32 to vector<8x1xi32>
    %54 = arith.cmpi eq, %42, %53 : vector<8x1xi32>
    %55 = arith.extui %54 : vector<8x1xi1> to vector<8x1xi32>
    %56 = arith.sitofp %55 : vector<8x1xi32> to vector<8x1xf32>
    %57 = vector.extract_strided_slice %43 {offsets = [1, 0], sizes = [1, 32], strides = [1, 1]} : vector<2x32xf32> to vector<1x32xf32>
    %58 = vector.broadcast %56 : vector<8x1xf32> to vector<8x32xf32>
    %59 = vector.broadcast %57 : vector<1x32xf32> to vector<8x32xf32>
    %60 = arith.mulf %58, %59 : vector<8x32xf32>
    %61 = arith.addf %52, %60 : vector<8x32xf32>
    %c0_i32_24 = arith.constant 0 : i32
    %c0_i32_25 = arith.constant 0 : i32
    %c0_i32_26 = arith.constant 0 : i32
    %62 = tpu.memref_slice %arg2[%c0_i32_25, %c0_i32_26] : memref<50x32xf32, #tpu.memory_space<any>> -> memref<1x32xf32, #tpu.memory_space<any>>
    %c0_i32_27 = arith.constant 0 : i32
    %c0_i32_28 = arith.constant 0 : i32
    %63 = tpu.memref_slice %arg9[%c0_i32_27, %c0_i32_28] : memref<8x32xf32, #tpu.memory_space<vmem>> -> memref<1x32xf32, #tpu.memory_space<vmem>>
    tpu.wait_dma2 semaphore(%arg10 : memref<!tpu.dma_semaphore, #tpu.memory_space<semaphore_mem>>) src(%62 : memref<1x32xf32, #tpu.memory_space<any>>) dst(%63 : memref<1x32xf32, #tpu.memory_space<vmem>>)
    %c1_i32_29 = arith.constant 1 : i32
    %c0_i32_30 = arith.constant 0 : i32
    %c0_i32_31 = arith.constant 0 : i32
    %64 = tpu.memref_slice %arg2[%c0_i32_30, %c0_i32_31] : memref<50x32xf32, #tpu.memory_space<any>> -> memref<1x32xf32, #tpu.memory_space<any>>
    %c0_i32_32 = arith.constant 0 : i32
    %c0_i32_33 = arith.constant 0 : i32
    %65 = tpu.memref_slice %arg9[%c0_i32_32, %c0_i32_33] : memref<8x32xf32, #tpu.memory_space<vmem>> -> memref<1x32xf32, #tpu.memory_space<vmem>>
    tpu.wait_dma2 semaphore(%arg10 : memref<!tpu.dma_semaphore, #tpu.memory_space<semaphore_mem>>) src(%64 : memref<1x32xf32, #tpu.memory_space<any>>) dst(%65 : memref<1x32xf32, #tpu.memory_space<vmem>>)
    %c2_i32_34 = arith.constant 2 : i32
    %c0_i32_35 = arith.constant 0 : i32
    %c0_i32_36 = arith.constant 0 : i32
    %66 = tpu.memref_slice %arg2[%c0_i32_35, %c0_i32_36] : memref<50x32xf32, #tpu.memory_space<any>> -> memref<1x32xf32, #tpu.memory_space<any>>
    %c0_i32_37 = arith.constant 0 : i32
    %c0_i32_38 = arith.constant 0 : i32
    %67 = tpu.memref_slice %arg9[%c0_i32_37, %c0_i32_38] : memref<8x32xf32, #tpu.memory_space<vmem>> -> memref<1x32xf32, #tpu.memory_space<vmem>>
    tpu.wait_dma2 semaphore(%arg10 : memref<!tpu.dma_semaphore, #tpu.memory_space<semaphore_mem>>) src(%66 : memref<1x32xf32, #tpu.memory_space<any>>) dst(%67 : memref<1x32xf32, #tpu.memory_space<vmem>>)
    %c3_i32_39 = arith.constant 3 : i32
    %c0_i32_40 = arith.constant 0 : i32
    %c0_i32_41 = arith.constant 0 : i32
    %68 = tpu.memref_slice %arg2[%c0_i32_40, %c0_i32_41] : memref<50x32xf32, #tpu.memory_space<any>> -> memref<1x32xf32, #tpu.memory_space<any>>
    %c0_i32_42 = arith.constant 0 : i32
    %c0_i32_43 = arith.constant 0 : i32
    %69 = tpu.memref_slice %arg9[%c0_i32_42, %c0_i32_43] : memref<8x32xf32, #tpu.memory_space<vmem>> -> memref<1x32xf32, #tpu.memory_space<vmem>>
    tpu.wait_dma2 semaphore(%arg10 : memref<!tpu.dma_semaphore, #tpu.memory_space<semaphore_mem>>) src(%68 : memref<1x32xf32, #tpu.memory_space<any>>) dst(%69 : memref<1x32xf32, #tpu.memory_space<vmem>>)
    %c4_i32_44 = arith.constant 4 : i32
    %c0_i32_45 = arith.constant 0 : i32
    %c0_i32_46 = arith.constant 0 : i32
    %70 = tpu.memref_slice %arg2[%c0_i32_45, %c0_i32_46] : memref<50x32xf32, #tpu.memory_space<any>> -> memref<1x32xf32, #tpu.memory_space<any>>
    %c0_i32_47 = arith.constant 0 : i32
    %c0_i32_48 = arith.constant 0 : i32
    %71 = tpu.memref_slice %arg9[%c0_i32_47, %c0_i32_48] : memref<8x32xf32, #tpu.memory_space<vmem>> -> memref<1x32xf32, #tpu.memory_space<vmem>>
    tpu.wait_dma2 semaphore(%arg10 : memref<!tpu.dma_semaphore, #tpu.memory_space<semaphore_mem>>) src(%70 : memref<1x32xf32, #tpu.memory_space<any>>) dst(%71 : memref<1x32xf32, #tpu.memory_space<vmem>>)
    %c5_i32_49 = arith.constant 5 : i32
    %c0_i32_50 = arith.constant 0 : i32
    %c0_i32_51 = arith.constant 0 : i32
    %72 = tpu.memref_slice %arg2[%c0_i32_50, %c0_i32_51] : memref<50x32xf32, #tpu.memory_space<any>> -> memref<1x32xf32, #tpu.memory_space<any>>
    %c0_i32_52 = arith.constant 0 : i32
    %c0_i32_53 = arith.constant 0 : i32
    %73 = tpu.memref_slice %arg9[%c0_i32_52, %c0_i32_53] : memref<8x32xf32, #tpu.memory_space<vmem>> -> memref<1x32xf32, #tpu.memory_space<vmem>>
    tpu.wait_dma2 semaphore(%arg10 : memref<!tpu.dma_semaphore, #tpu.memory_space<semaphore_mem>>) src(%72 : memref<1x32xf32, #tpu.memory_space<any>>) dst(%73 : memref<1x32xf32, #tpu.memory_space<vmem>>)
    %c6_i32_54 = arith.constant 6 : i32
    %c0_i32_55 = arith.constant 0 : i32
    %c0_i32_56 = arith.constant 0 : i32
    %74 = tpu.memref_slice %arg2[%c0_i32_55, %c0_i32_56] : memref<50x32xf32, #tpu.memory_space<any>> -> memref<1x32xf32, #tpu.memory_space<any>>
    %c0_i32_57 = arith.constant 0 : i32
    %c0_i32_58 = arith.constant 0 : i32
    %75 = tpu.memref_slice %arg9[%c0_i32_57, %c0_i32_58] : memref<8x32xf32, #tpu.memory_space<vmem>> -> memref<1x32xf32, #tpu.memory_space<vmem>>
    tpu.wait_dma2 semaphore(%arg10 : memref<!tpu.dma_semaphore, #tpu.memory_space<semaphore_mem>>) src(%74 : memref<1x32xf32, #tpu.memory_space<any>>) dst(%75 : memref<1x32xf32, #tpu.memory_space<vmem>>)
    %c7_i32_59 = arith.constant 7 : i32
    %c0_i32_60 = arith.constant 0 : i32
    %c0_i32_61 = arith.constant 0 : i32
    %76 = tpu.memref_slice %arg2[%c0_i32_60, %c0_i32_61] : memref<50x32xf32, #tpu.memory_space<any>> -> memref<1x32xf32, #tpu.memory_space<any>>
    %c0_i32_62 = arith.constant 0 : i32
    %c0_i32_63 = arith.constant 0 : i32
    %77 = tpu.memref_slice %arg9[%c0_i32_62, %c0_i32_63] : memref<8x32xf32, #tpu.memory_space<vmem>> -> memref<1x32xf32, #tpu.memory_space<vmem>>
    tpu.wait_dma2 semaphore(%arg10 : memref<!tpu.dma_semaphore, #tpu.memory_space<semaphore_mem>>) src(%76 : memref<1x32xf32, #tpu.memory_space<any>>) dst(%77 : memref<1x32xf32, #tpu.memory_space<vmem>>)
    %c0_64 = arith.constant 0 : index
    %c0_65 = arith.constant 0 : index
    %78 = vector.load %arg9[%c0_64, %c0_65] : memref<8x32xf32, #tpu.memory_space<vmem>>, vector<8x32xf32>
    %79 = arith.addf %78, %61 : vector<8x32xf32>
    %cst = arith.constant dense<0.000000e+00> : vector<8xf32>
    %80 = vector.multi_reduction <add>, %79, %cst [1] : vector<8x32xf32> to vector<8xf32>
    %81 = vector.shape_cast %80 : vector<8xf32> to vector<8x1xf32>
    %cst_66 = arith.constant 3.200000e+01 : f32
    %82 = vector.broadcast %cst_66 : f32 to vector<8x1xf32>
    %83 = arith.divf %81, %82 : vector<8x1xf32>
    %84 = vector.broadcast %83 : vector<8x1xf32> to vector<8x32xf32>
    %85 = arith.subf %79, %84 : vector<8x32xf32>
    %86 = arith.mulf %85, %85 : vector<8x32xf32>
    %cst_67 = arith.constant dense<0.000000e+00> : vector<8xf32>
    %87 = vector.multi_reduction <add>, %86, %cst_67 [1] : vector<8x32xf32> to vector<8xf32>
    %88 = vector.shape_cast %87 : vector<8xf32> to vector<8x1xf32>
    %cst_68 = arith.constant 3.200000e+01 : f32
    %89 = vector.broadcast %cst_68 : f32 to vector<8x1xf32>
    %90 = arith.divf %88, %89 : vector<8x1xf32>
    %cst_69 = arith.constant 9.99999996E-13 : f32
    %91 = vector.broadcast %cst_69 : f32 to vector<8x1xf32>
    %92 = arith.addf %90, %91 : vector<8x1xf32>
    %93 = math.rsqrt %92 : vector<8x1xf32>
    %94 = vector.broadcast %93 : vector<8x1xf32> to vector<8x32xf32>
    %95 = arith.mulf %85, %94 : vector<8x32xf32>
    %c0_70 = arith.constant 0 : index
    %c0_71 = arith.constant 0 : index
    %96 = vector.load %arg6[%c0_70, %c0_71] : memref<1x32xf32, #tpu.memory_space<vmem>>, vector<1x32xf32>
    %97 = vector.broadcast %96 : vector<1x32xf32> to vector<8x32xf32>
    %98 = arith.mulf %95, %97 : vector<8x32xf32>
    %c0_72 = arith.constant 0 : index
    %c0_73 = arith.constant 0 : index
    %99 = vector.load %arg7[%c0_72, %c0_73] : memref<1x32xf32, #tpu.memory_space<vmem>>, vector<1x32xf32>
    %100 = vector.broadcast %99 : vector<1x32xf32> to vector<8x32xf32>
    %101 = arith.addf %98, %100 : vector<8x32xf32>
    %c0_74 = arith.constant 0 : index
    %c0_75 = arith.constant 0 : index
    %102 = vector.load %arg8[%c0_74, %c0_75] : memref<8x32xf32, #tpu.memory_space<vmem>>, vector<8x32xf32>
    tpu.vector_store %arg8[%c0_74, %c0_75], %101 {strides = array<i32>} : memref<8x32xf32, #tpu.memory_space<vmem>>, vector<8x32xf32>,
    return
  }
  func.func @transform_1(%arg0: i32, %arg1: memref<16xi32, #tpu.memory_space<smem>>) -> (i32, i32) {
    %c0_i32 = arith.constant 0 : i32
    %c0_i32_0 = arith.constant 0 : i32
    return %arg0, %c0_i32 : i32, i32
  }
  func.func @transform_2(%arg0: i32, %arg1: memref<16xi32, #tpu.memory_space<smem>>) -> (i32, i32) {
    %c0_i32 = arith.constant 0 : i32
    %c0_i32_0 = arith.constant 0 : i32
    %c0_i32_1 = arith.constant 0 : i32
    return %c0_i32, %c0_i32_0 : i32, i32
  }
  func.func @transform_3(%arg0: i32, %arg1: memref<16xi32, #tpu.memory_space<smem>>) -> (i32, i32) {
    %c1_i32 = arith.constant 1 : i32
    %c0_i32 = arith.constant 0 : i32
    %0 = arith.cmpi eq, %c1_i32, %c0_i32 : i32
    %c1_i32_0 = arith.constant 1 : i32
    %1 = arith.select %0, %c1_i32_0, %c1_i32 : i32
    %2 = arith.remsi %arg0, %1 : i32
    %c0_i32_1 = arith.constant 0 : i32
    %3 = arith.cmpi ne, %2, %c0_i32_1 : i32
    %c0_i32_2 = arith.constant 0 : i32
    %4 = arith.cmpi slt, %2, %c0_i32_2 : i32
    %c0_i32_3 = arith.constant 0 : i32
    %5 = arith.cmpi slt, %1, %c0_i32_3 : i32
    %6 = arith.xori %4, %5 : i1
    %7 = arith.andi %6, %3 : i1
    %8 = arith.addi %2, %1 : i32
    %9 = arith.select %7, %8, %2 : i32
    %c0_i32_4 = arith.constant 0 : i32
    %c0_i32_5 = arith.constant 0 : i32
    return %9, %c0_i32_4 : i32, i32
  }
  func.func @transform_4(%arg0: i32, %arg1: memref<16xi32, #tpu.memory_space<smem>>) -> (i32, i32) {
    %c0_i32 = arith.constant 0 : i32
    %c0_i32_0 = arith.constant 0 : i32
    %c0_i32_1 = arith.constant 0 : i32
    return %c0_i32, %c0_i32_0 : i32, i32
  }
  func.func @transform_5(%arg0: i32, %arg1: memref<16xi32, #tpu.memory_space<smem>>) -> (i32, i32) {
    %c0_i32 = arith.constant 0 : i32
    %c0_i32_0 = arith.constant 0 : i32
    %c0_i32_1 = arith.constant 0 : i32
    return %c0_i32, %c0_i32_0 : i32, i32
  }
  func.func @transform_6(%arg0: i32, %arg1: memref<16xi32, #tpu.memory_space<smem>>) -> (i32, i32) {
    %c0_i32 = arith.constant 0 : i32
    %c0_i32_0 = arith.constant 0 : i32
    return %arg0, %c0_i32 : i32, i32
  }
}

</mosaic_0001>

<bundles_post_ra>
// kernel: tpu_custom_call.1
= control target key start
LH: loop header
LB: loop body
LE: loop exit
PB: predicated region body
PF: predicated region fallthrough
CT: control target
= control target key end

     0   :  { %s888_s27 = smov [#allocation5]   ;;  %s1078_s0 = inlined_call_operand.vmem [shape: s32[16], index: 0, kind: input, shape index: {}]   ;;  %s1079_s1 = inlined_call_operand.vmem [shape: f32[50,32], index: 1, kind: input, shape index: {}]   ;;  %s1080_s2 = inlined_call_operand.vmem [shape: s32[16,1], index: 2, kind: input, shape index: {}]   ;;  %s1081_s3 = inlined_call_operand.vmem [shape: f32[2,32], index: 3, kind: input, shape index: {}]   ;;  %s1082_s4 = inlined_call_operand.vmem [shape: f32[8,32], index: 4, kind: input, shape index: {}]   ;;  %s1083_s5 = inlined_call_operand.vmem [shape: f32[1,32], index: 5, kind: input, shape index: {}]   ;;  %s1084_s6 = inlined_call_operand.vmem [shape: f32[1,32], index: 6, kind: input, shape index: {}]   ;;  %s1085_s7 = inlined_call_operand.hbm [shape: f32[16,32], index: 7, kind: output, shape index: {}]  }
   0x1   :  { %s13_s26 = sshll.u32 %s1078_s0, 4  ;;  %s14_s26 = int_to_ptr.vmem [resolvable:$true] %s13_s26 }
   0x2   :  { %16 = dma.vmem_to_smem %s14_s26, 16, %s888_s27, [#allocation4] }
   0x3   :  { %864 = dma.done.wait [#allocation4], 16 }
   0x4   :  { %865 = vsyncadd [#allocation4], 4294967280 }
   0x5   :  { %19 = sfence }
   0x6   :  { %20 = vsyncpa [#allocation7], 0 }
   0x7   :  { %22 = vsyncpa [#allocation7 + $0x1], 0  ;;  %s935_s28 = smov 0   ;;  %s937_s29 = smov 0  }
   0x8   :  { %s939_s30 = smov 0   ;;  %s941_s8 = smov 0  }
   0x9 LB: > { %s738_s0 = sadd.s32 4294967295, %s886_s8   ;;  %s739_s9 = sadd.s32 4294967294, %s886_s8   ;;  %s886_s8 = sphi %s941_s8, %s1095_s8   ;;  %s882_s30 = sphi %s939_s30, %s1094_s30   ;;  %s878_s29 = sphi %s937_s29, %s1093_s29   ;;  %s874_s28 = sphi %s935_s28, %s1092_s28  }
   0xa   : > { %s958_s10 = sadd.s32 1, %s886_s8   ;;  %s145_s11 = sadd.s32 1, %s882_s30 }
   0xb   : > { %s142_s12 = ssub.s32 %s886_s8, %s958_s10  ;;  %p155_p0 = scmp.ne.s32.totalorder %s882_s30, %s878_s29 }
   0xc   : > { %p143_p1 = scmp.eq.s32.totalorder %s142_s12, 0  ;;  %p156_p2 = scmp.eq.s32.totalorder %s738_s0, 1 }
   0xd   : > { %p161_p3 = scmp.ne.s32.totalorder %s878_s29, %s874_s28  ;;  %p162_p4 = scmp.eq.s32.totalorder %s739_s9, 1 }
   0xe   : > { %s968_s13 = scalar_select %p143_p1, %s882_s30, %s145_s11  }
   0xf   : > { %p970_p5 = por %p156_p2, %p155_p0  ;;  %p974_p6 = por %p162_p4, %p161_p3 }
  0x10   : > { %p742_p7 = scmp.ge.s32.totalorder %s886_s8, 1  ;;  %p199_p8 = scmp.lt.s32.totalorder %s886_s8, 3 }
  0x12   : > { %p200_p9 = pnand %p742_p7, %p199_p8 }
  0x13   : > { %s1086_s16 = sand.u32 (!%p200_p9), 1, %s878_s29   ;;  %p226_p10 = scmp.lt.s32.totalorder (!%p200_p9), %s738_s0, 1 }
  0x14   : > { %203 = sbr.rel (%p200_p9) target bundleno = 502 (0x1f6), region = 40  ;;  %s983_s17 = sshll.u32 (!%p200_p9), %s1086_s16, 3 }
  0x15   : > { %s985_s18 = sshll.u32 (!%p200_p9), %s738_s0, 3 }
  0x16   : > { %s231_s19 = sld [smem:[#allocation5 + %s985_s18]] (!%p200_p9) }
  0x19   : > { %s1097_s0 = smov (!%p226_p10, %s738_s0), 1 }
  0x1a   : > { %s744_s20 = sshll.u32 %s1097_s0, 3 }
  0x1b   : > { %s991_s23 = scalar_lea.vmem %s1080_s2, %s744_s20 }
  0x1c   : > { %s232_s26 = scalar_lea.vmem %s1079_s1, %s231_s19 }
  0x1d   : > { %v247_v0 = vld [vmem:[%s232_s26] sm:$0x1] }
  0x1e   : > { %248 = vst [vmem:[#allocation2] sm:$0x1] %v247_v0 }
  0x1f   : > { %266 = vsyncadd [#allocation3], 16  ;;  %s267_s9 = sadd.s32 1, %s985_s18 }
  0x20   : > { %s268_s11 = sld [smem:[#allocation5 + %s267_s9]] }
  0x26   : > { %s269_s0 = scalar_lea.vmem %s1079_s1, %s268_s11 }
  0x27   : > { %v285_v1 = vld [vmem:[%s269_s0] sm:$0x1] }
  0x28   : > { %286 = vst [vmem:[#allocation2 + $0x1] sm:$0x1] %v285_v1 }
  0x29   : > { %304 = vsyncadd [#allocation3], 16  ;;  %s305_s20 = sadd.s32 2, %s985_s18 }
  0x2a   : > { %s306_s21 = sld [smem:[#allocation5 + %s305_s20]] }
  0x30   : > { %s307_s19 = scalar_lea.vmem %s1079_s1, %s306_s21 }
  0x31   : > { %v323_v2 = vld [vmem:[%s307_s19] sm:$0x1] }
  0x32   : > { %324 = vst [vmem:[#allocation2 + $0x2] sm:$0x1] %v323_v2 }
  0x33   : > { %342 = vsyncadd [#allocation3], 16  ;;  %s343_s25 = sadd.s32 3, %s985_s18 }
  0x34   : > { %s344_s26 = sld [smem:[#allocation5 + %s343_s25]] }
  0x3a   : > { %s345_s16 = scalar_lea.vmem %s1079_s1, %s344_s26 }
  0x3b   : > { %v361_v3 = vld [vmem:[%s345_s16] sm:$0x1] }
  0x3c   : > { %362 = vst [vmem:[#allocation2 + $0x3] sm:$0x1] %v361_v3 }
  0x3d   : > { %380 = vsyncadd [#allocation3], 16  ;;  %s381_s11 = sadd.s32 4, %s985_s18 }
  0x3e   : > { %s382_s12 = sld [smem:[#allocation5 + %s381_s11]] }
  0x44   : > { %s383_s21 = scalar_lea.vmem %s1079_s1, %s382_s12 }
  0x45   : > { %v399_v4 = vld [vmem:[%s383_s21] sm:$0x1] }
  0x46   : > { %400 = vst [vmem:[#allocation2 + $0x4] sm:$0x1] %v399_v4 }
  0x47   : > { %418 = vsyncadd [#allocation3], 16  ;;  %s419_s22 = sadd.s32 5, %s985_s18 }
  0x48   : > { %s420_s24 = sld [smem:[#allocation5 + %s419_s22]] }
  0x4e   : > { %s421_s27 = scalar_lea.vmem %s1079_s1, %s420_s24 }
  0x4f   : > { %v437_v5 = vld [vmem:[%s421_s27] sm:$0x1] }
  0x50   : > { %438 = vst [vmem:[#allocation2 + $0x5] sm:$0x1] %v437_v5 }
  0x51   : > { %456 = vsyncadd [#allocation3], 16  ;;  %s457_s26 = sadd.s32 6, %s985_s18 }
  0x52   : > { %s458_s9 = sld [smem:[#allocation5 + %s457_s26]] }
  0x58   : > { %s459_s12 = scalar_lea.vmem %s1079_s1, %s458_s9 }
  0x59   : > { %v475_v6 = vld [vmem:[%s459_s12] sm:$0x1] }
  0x5a   : > { %476 = vst [vmem:[#allocation2 + $0x6] sm:$0x1] %v475_v6 }
  0x5b   : > { %494 = vsyncadd [#allocation3], 16  ;;  %s495_s0 = sadd.s32 7, %s985_s18  ;;  %v534_v8 = vld [vmem:[%s991_s23] sm:$0xff]  ;;  %v889_v9 = vmov 0  }
  0x5c   : > { %s496_s20 = sld [smem:[#allocation5 + %s495_s0]]  ;;  %796 = vset.pattern.permute.xlu0 %v889_v9  ;;  %vm536_vm0 = vcmp.eq.s32.totalorder %v534_v8, 0  ;;  %vm547_vm1 = vcmp.eq.s32.totalorder %v534_v8, 1 }
  0x62   : > { %s497_s24 = scalar_lea.vmem %s1079_s1, %s496_s20 }
  0x63   : > { %v513_v7 = vld [vmem:[%s497_s24] sm:$0x1] }
  0x64   : > { %514 = vst [vmem:[#allocation2 + $0x7] sm:$0x1] %v513_v7 }
  0x65   : > { %532 = vsyncadd [#allocation3], 16  ;;  %v890_v10 = vmov 0.0   ;;  %v535_v14 = vld [vmem:[%s1081_s3] sm:$0x3] }
  0x66   : > { %v746_v11 = vsel %vm536_vm0, 1.0, %v890_v10  ;;  %v747_v12 = vsel %vm547_vm1, 1.0, %v890_v10  ;;  %v544_v15 = vperm.slane %v535_v14, 0  ;;  %v555_v17 = vperm.slane %v535_v14, 1  ;;  %v533_v20 = vld [vmem:[%s1082_s4] sm:$0xff] }
  0x67   : > { %v797_v13 = vpack.i.bf16 %v747_v12, %v746_v11 }
  0x69   : > { %798 = vperm.xlu0 %796, %v797_v13  }
  0xdb   : > { %v799_v16 = vpop.permute.xlu0 %798 }
  0xdc   : > { %v801_v18 = vunpack.i.h.bf16 %v799_v16  ;;  %v800_v19 = vunpack.i.l.bf16 %v799_v16 }
  0xde   : > { %v545_v21 = vmul.f32 %v800_v19, %v544_v15  ;;  %v556_v22 = vmul.f32 %v801_v18, %v555_v17 }
  0xe0   : > { %v546_v23 = vadd.f32 %v545_v21, %v533_v20 }
  0xe2   : > { %v557_v24 = vadd.f32 %v556_v22, %v546_v23 }
  0xe3   : > { %866 = dma.done.wait [#allocation3], 128 }
  0xe4   : > { %867 = vsyncadd [#allocation3], 4294967168  ;;  %v575_v25 = vld [vmem:[#allocation2] sm:$0xff]  ;;  %vm577_vm2 = vcmask 261120   ;;  %v891_v28 = vmov 32.0   ;;  %s629_s12 = scalar_lea.hbm %s1085_s7, %s985_s18  ;;  %s1089_s21 = scalar_lea.vmem [#allocation6], %s983_s17 }
  0xe5   : > { %v576_v26 = vadd.f32 %v575_v25, %v557_v24  ;;  %804 = vrcp.f32 %v891_v28  ;;  %v802_v49 = vld [vmem:[%s1083_s5] ss:$0 sm:$0xff]  ;;  %s631_s22 = sshll.u32 %s1089_s21, 4  ;;  %s633_s24 = sshll.u32 %s629_s12, 4  ;;  %s632_s22 = int_to_ptr.vmem [resolvable:$true] %s631_s22  ;;  %s634_s24 = int_to_ptr.hbm [resolvable:$true] %s633_s24 }
  0xe6   : > { %v803_v52 = vld [vmem:[%s1084_s6] ss:$0 sm:$0xff]  ;;  %s1090_s19 = smov %s1089_s21  ;;  %s1091_s25 = sand.u32 1, %s878_s29  }
  0xe7   : > { %v578_v27 = vsel %vm577_vm2, %v576_v26, 0.0  ;;  %s619_s23 = scalar_lea.sflag [#allocation7], %s1091_s25  ;;  %s834_s18 = sshra.s32 %s634_s24, 4  ;;  %s835_s18 = int_to_ptr.hbm [resolvable:$true] %s834_s18 }
  0xe8   : > { %579 = vadd.xlane.f32.xlu0 %v578_v27  ;;  %s836_s27 = scalar_lea.hbm %s835_s18, 8  ;;  %s840_s16 = scalar_lea.hbm %s1085_s7, 16 }
  0xe9   : > { %p837_p11 = scmp.ne.s32.totalorder %s835_s18, %s836_s27  ;;  %p841_p0 = scmp.lt.s32.totalorder %s835_s18, %s1085_s7 }
  0xea   : > { %p842_p1 = scmp.lt.s32.totalorder %s840_s16, %s836_s27 }
  0xeb   : > { %v805_v29 = vpop.eup %804  ;;  %p838_p12 = pnand %p837_p11, %p970_p5 }
  0xec   : > { %v582_v30 = vmul.f32 32.0, %v805_v29  ;;  %vm586_vm3 = vweird.f32 %v805_v29  ;;  %p843_p2 = por %p842_p1, %p841_p0 }
  0xed   : > { %p839_p13 = pneg %p838_p12 }
  0xee   : > { %v583_v31 = vsub.f32 1.0, %v582_v30 }
  0xef   : > { %p844_p3 = pnand %p843_p2, %p839_p13 }
  0xf0   : > { %v584_v32 = vmul.f32 %v805_v29, %v583_v31 }
  0xf2   : > { %v585_v33 = vadd.f32 %v805_v29, %v584_v32 }
  0xf4   : > { %v587_v34 = vsel %vm586_vm3, %v805_v29, %v585_v33 }
 0x15b   : > { %v580_v35 = vpop.xlane.xlu0 %579 }
 0x15c   : > { %v588_v36 = vmul.f32 %v587_v34, %v580_v35 }
 0x15e   : > { %v589_v37 = vsub.f32 %v576_v26, %v588_v36 }
 0x160   : > { %v590_v38 = vmul.f32 %v589_v37, %v589_v37 }
 0x162   : > { %v591_v39 = vsel %vm577_vm2, %v590_v38, 0.0 }
 0x163   : > { %592 = vadd.xlane.f32.xlu0 %v591_v39 }
 0x1d6   : > { %v593_v40 = vpop.xlane.xlu0 %592 }
 0x1d7   : > { %v594_v41 = vmul.f32 %v593_v40, %v587_v34 }
 0x1d9   : > { %v595_v42 = vadd.f32 1e-12, %v594_v41 }
 0x1db   : > { %806 = vrsqrt.f32 %v595_v42  ;;  %vm602_vm5 = vweird.f32 %v595_v42 }
 0x1e1   : > { %v807_v43 = vpop.eup %806 }
 0x1e2   : > { %v597_v44 = vmul.f32 %v807_v43, %v595_v42  ;;  %vm603_vm4 = vweird.f32 %v807_v43 }
 0x1e3   : > { %vm604_vm6 = vmor %vm602_vm5, %vm603_vm4 }
 0x1e4   : > { %v598_v45 = vmul.f32 %v807_v43, %v597_v44 }
 0x1e6   : > { %v599_v46 = vmul.f32 0.5, %v598_v45 }
 0x1e8   : > { %v600_v47 = vsub.f32 1.5, %v599_v46 }
 0x1ea   : > { %v601_v48 = vmul.f32 %v807_v43, %v600_v47 }
 0x1ec   : > { %v605_v50 = vsel %vm604_vm6, %v807_v43, %v601_v48 }
 0x1ed   : > { %v606_v51 = vmul.f32 %v605_v50, %v589_v37 }
 0x1ef   : > { %v611_v53 = vmul.f32 %v802_v49, %v606_v51 }
 0x1f1   : > { %v616_v54 = vadd.f32 %v803_v52, %v611_v53 }
 0x1f3   : > { %617 = vst.msk [vmem:[%s1090_s19] sm:$0xff] %vm577_vm2, %v616_v54 }
 0x1f4   : > { %847 = shalt.err (!%p844_p3)
}
 0x1f5   : > { %753 = dma.vmem_to_hbm [thread:$0]  (%p970_p5), %s632_s22, 128, %s634_s24, %s619_s23  }
 0x1f6 PF: > { %p759_p4 = scmp.ge.s32.totalorder %s886_s8, 2  ;;  %s645_s17 = sand.u32 1, %s874_s28  }
 0x1f7   : > { %s646_s0 = scalar_lea.sflag [#allocation7], %s645_s17 }
 0x1f8   : > { %p756_p7 = pnand %p759_p4, %p974_p6 }
 0x1fa   : > { %p757_p8 = pneg %p756_p7 }
 0x1fc   : > { %869 = dma.done.wait (%p757_p8), %s646_s0, 128  }
 0x1fd   : > { %871 = vsyncadd (%p757_p8), %s646_s0, 4294967168  ;;  %p25_p9 = scmp.ge.s32.totalorder %s958_s10, 4   ;;  %s1092_s28 = smov %s878_s29 }
 0x1fe   : > { %s1093_s29 = smov %s882_s30  ;;  %s1094_s30 = smov %s968_s13 }
 0x1ff   : > { %s1095_s8 = smov %s958_s10  ;;  %27 = sbr.rel (!%p25_p9) target bundleno = 9 (0x9), region = 362 }
 0x204   :  { %652 = vsyncpa [#allocation7], 1 }
 0x205   :  { %654 = vsyncpa [#allocation7 + $0x1], 1 }
 0x206   :  { %655 = vsyncmov [#allocation3] }
 0x209   :  { %s656_s8 = vpop.sfrf %655 }
 0x20a   :  { %p752_p5 = scmp.ne.s32.totalorder %s656_s8, 0 }
 0x20c   :  { %660 = shalt.err (%p752_p5)  }

</bundles_post_ra>
